<compile_context>
chip_gen: v7x
topology: tpu7x:2x2x1
jax: 0.10.0
libtpu: 0.0.40
codegen_flags: <defaults>
</compile_context>

<pallas_src>
import functools

import jax
import jax.numpy as jnp
from jax.experimental import pallas as pl
from jax.experimental.pallas import tpu as pltpu


def _round_up(x, m):
    return ((x + m - 1) // m) * m


def _vmem_capacity_bytes():
    """Physical VMEM of the current chip (conservative fallback: v7x's 64 MiB)."""
    try:
        cap = getattr(pltpu.get_tpu_info(), "vmem_capacity_bytes", None)
        if cap:
            return int(cap)
    except Exception:
        pass
    return 64 * 1024 * 1024


def _default_vmem_budget():
    # ~half of physical: ~64 MiB on v5e/v6e (128 MiB), ~32 MiB on v7x (64 MiB).
    return max(32 * 1024 * 1024, _vmem_capacity_bytes() // 2)


def _plan_tiles(batch, in_p, hid_p, out_p, vmem_budget_bytes):
    """Pick hidden (reduction) tile th and batch tile tb from a VMEM budget."""
    batch8 = _round_up(max(int(batch), 1), 8)

    # Hidden tile: keep W1/b1/W2 fully resident (single-buffered, constant
    # index_map) when they fit ~60% of the budget; else K-tile the hidden dim
    # (those tiles are double-buffered along the reduction axis).
    weight_budget = int(vmem_budget_bytes * 0.6)
    resident_bytes = in_p * hid_p * 2 + hid_p * out_p * 2 + hid_p * 4 + out_p * 4
    if resident_bytes <= weight_budget:
        th = hid_p
        weight_bytes = resident_bytes
    else:
        per_col = 2 * (in_p * 2 + out_p * 2 + 4)          # 2 buffers per hidden column
        th = (max(weight_budget - out_p * 4, per_col * 128) // per_col) // 128 * 128
        th = max(128, min(th, hid_p))
        while hid_p % th:                                  # th must divide hid_p exactly
            th -= 128
        weight_bytes = 2 * (in_p * th * 2 + th * out_p * 2 + th * 4) + out_p * 4

    # Batch tile: double-buffered f32 x/out tiles + f32 accumulator scratch + the
    # in-kernel f32/bf16 intermediates (h, casts) all count against the budget.
    per_row = (2 * in_p * 4          # x tile (f32, double-buffered)
               + 2 * out_p * 4       # out tile (f32, double-buffered)
               + out_p * 4           # f32 accumulator scratch
               + in_p * 2            # bf16 cast of x
               + th * 6              # h in f32 + its bf16 cast
               + out_p * 4)          # activation temp
    tb = (vmem_budget_bytes - weight_bytes) // per_row
    tb = max(8, min(1024, (tb // 8) * 8))
    tb = min(tb, batch8)
    # v7x has two TensorCores sharing the "parallel" batch axis: guarantee >= 2
    # batch grid steps whenever the batch is big enough to split.
    if batch8 >= 16:
        tb = min(tb, _round_up(pl.cdiv(batch8, 2), 8))
    batch_p = _round_up(batch8, tb)
    return th, tb, batch_p, weight_bytes, per_row


def _generator_fcn_kernel(x_ref, w1_ref, b1_ref, w2_ref, b2_ref, o_ref, acc_ref,
                          *, leaky: bool, activation: str):
    k = pl.program_id(1)

    @pl.when(k == 0)
    def _():
        acc_ref[...] = jnp.zeros_like(acc_ref)

    # fc1 (this hidden tile): bf16 operands on the MXU, f32 accumulation;
    # bias + (Leaky)ReLU in f32.
    x_bf16 = x_ref[...].astype(jnp.bfloat16)
    h = jnp.dot(x_bf16, w1_ref[...], preferred_element_type=jnp.float32) + b1_ref[...]
    if leaky:
        h = jnp.maximum(h, 0.01 * h)          # PyTorch LeakyReLU default slope
    else:
        h = jnp.maximum(h, 0.0)

    # fc2 partial product for this hidden tile, accumulated in f32.
    acc_ref[...] += jnp.dot(h.astype(jnp.bfloat16), w2_ref[...],
                            preferred_element_type=jnp.float32)

    @pl.when(k == pl.num_programs(1) - 1)
    def _():
        out = acc_ref[...] + b2_ref[...]
        if activation == 'sigmoid':
            # EUP-friendly, numerically stable sigmoid: one tanh, no divide.
            out = 0.5 * (jnp.tanh(0.5 * out) + 1.0)
        elif activation == 'tanh':
            out = jnp.tanh(out)
        o_ref[...] = out.astype(o_ref.dtype)


def prepare_generator_params(w1, b1, w2, b2):
    """Pad/cast the weights ONCE (hoisted out of the per-call forward path).

    w1: (In, H); b1: (1, H) or (H,); w2: (H, Out); b2: (1, Out) or (Out,)
    (weights stored transposed relative to PyTorch nn.Linear's (out, in)).
    """
    in_size, hidden = w1.shape
    out_size = w2.shape[1]
    in_p, hid_p, out_p = (_round_up(s, 128) for s in (in_size, hidden, out_size))

    w1_p = jnp.zeros((in_p, hid_p), jnp.bfloat16).at[:in_size, :hidden].set(
        w1.astype(jnp.bfloat16))
    b1_p = jnp.zeros((1, hid_p), jnp.float32).at[:, :hidden].set(
        b1.astype(jnp.float32).reshape(1, -1))
    w2_p = jnp.zeros((hid_p, out_p), jnp.bfloat16).at[:hidden, :out_size].set(
        w2.astype(jnp.bfloat16))
    b2_p = jnp.zeros((1, out_p), jnp.float32).at[:, :out_size].set(
        b2.astype(jnp.float32).reshape(1, -1))
    return dict(w1=w1_p, b1=b1_p, w2=w2_p, b2=b2_p,
                in_size=in_size, hidden=hidden, out_size=out_size)


def generator_fcn_forward(x, params, *, leaky=False, activation='sigmoid',
                          out_dtype=jnp.float32, vmem_budget_bytes=None):
    """Fused fc1 -> (Leaky)ReLU -> fc2 -> sigmoid/tanh matching GeneratorFCN.forward."""
    w1_p, b1_p, w2_p, b2_p = params["w1"], params["b1"], params["w2"], params["b2"]
    in_size, out_size = params["in_size"], params["out_size"]
    in_p, hid_p = w1_p.shape
    out_p = w2_p.shape[1]
    batch = x.shape[0]
    assert x.shape == (batch, in_size)

    if vmem_budget_bytes is None:
        vmem_budget_bytes = _default_vmem_budget()

    th, tb, batch_p, weight_bytes, per_row = _plan_tiles(
        batch, in_p, hid_p, out_p, vmem_budget_bytes)
    num_k = hid_p // th

    # x stays f32 (cast to bf16 inside the kernel); pad only if shapes don't match.
    x_p = x.astype(jnp.float32)
    if x_p.shape != (batch_p, in_p):
        x_p = jnp.zeros((batch_p, in_p), jnp.float32).at[:batch, :in_size].set(x_p)

    kernel = functools.partial(_generator_fcn_kernel, leaky=leaky, activation=activation)

    flops = 2 * batch_p * (in_p * hid_p + hid_p * out_p)
    transc = batch_p * out_p if activation in ('sigmoid', 'tanh') else 0
    weight_stream = w1_p.size * 2 + w2_p.size * 2 + b1_p.size * 4
    if num_k > 1:
        weight_stream *= batch_p // tb          # weights re-streamed per batch tile
    bytes_accessed = int(x_p.size * 4 + weight_stream + b2_p.size * 4
                         + batch_p * out_p * jnp.dtype(out_dtype).itemsize)

    def _call(consts_mode):
        # Single-buffer the constant-index_map operands (they are DMA'd once);
        # when the hidden dim is K-tiled, W1/b1/W2 vary along k and keep the
        # default double buffering.
        w_mode = consts_mode if num_k == 1 else None
        wb = weight_bytes
        if num_k == 1 and consts_mode is None:
            wb = 2 * weight_bytes               # fallback path double-buffers weights
        vmem_limit = min(_vmem_capacity_bytes(),
                         int(wb + tb * per_row + (8 << 20)))

        return pl.pallas_call(
            kernel,
            out_shape=jax.ShapeDtypeStruct((batch_p, out_p), out_dtype),
            grid=(batch_p // tb, num_k),
            in_specs=[
                pl.BlockSpec((tb, in_p), lambda i, k: (i, 0)),                    # x tile
                pl.BlockSpec((in_p, th), lambda i, k: (0, k), pipeline_mode=w_mode),   # W1
                pl.BlockSpec((1, th), lambda i, k: (0, k), pipeline_mode=w_mode),      # b1
                pl.BlockSpec((th, out_p), lambda i, k: (k, 0), pipeline_mode=w_mode),  # W2
                pl.BlockSpec((1, out_p), lambda i, k: (0, 0), pipeline_mode=consts_mode),  # b2
            ],
            out_specs=pl.BlockSpec((tb, out_p), lambda i, k: (i, 0)),
            scratch_shapes=[pltpu.VMEM((tb, out_p), jnp.float32)],
            compiler_params=pltpu.CompilerParams(
                dimension_semantics=("parallel", "arbitrary"),
                vmem_limit_bytes=int(vmem_limit)),
            cost_estimate=pl.CostEstimate(flops=flops, transcendentals=transc,
                                          bytes_accessed=bytes_accessed),
        )(x_p, w1_p, b1_p, w2_p, b2_p)

    try:
        out_padded = _call(pl.Buffered(1))
    except Exception:
        # TODO(synk): drop this fallback once Buffered(1) single-buffering is
        # guaranteed by the minimum supported jax version.
        out_padded = _call(None)

    return out_padded[:batch, :out_size]


def init_params(key, input_size, hidden_size, output_size):
    """Deterministic init mimicking nn.Linear's U(-1/sqrt(fan_in), 1/sqrt(fan_in))."""
    k1, k2, k3, k4 = jax.random.split(key, 4)
    lim1 = 1.0 / jnp.sqrt(input_size)
    lim2 = 1.0 / jnp.sqrt(hidden_size)
    w1 = jax.random.uniform(k1, (input_size, hidden_size), jnp.float32, -lim1, lim1)
    b1 = jax.random.uniform(k2, (1, hidden_size), jnp.float32, -lim1, lim1)
    w2 = jax.random.uniform(k3, (hidden_size, output_size), jnp.float32, -lim2, lim2)
    b2 = jax.random.uniform(k4, (1, output_size), jnp.float32, -lim2, lim2)
    return w1, b1, w2, b2


if __name__ == "__main__":
    key = jax.random.PRNGKey(0)
    kx, kp, kx2, kp2 = jax.random.split(key, 4)
    bf = lambda a: a.astype(jnp.bfloat16).astype(jnp.float32)

    # --- Case 1: ReLU + sigmoid, small shapes (weights fully VMEM-resident). ---
    batch, input_size, hidden_size, output_size = 8, 16, 32, 16
    x = jax.random.normal(kx, (batch, input_size), jnp.float32)
    w1, b1, w2, b2 = init_params(kp, input_size, hidden_size, output_size)
    params = prepare_generator_params(w1, b1, w2, b2)       # pad/cast once, not per call

    out = generator_fcn_forward(x, params, leaky=False, activation='sigmoid')
    out = jax.block_until_ready(out)
    assert out.shape == (batch, output_size)

    # bf16-faithful reference (same quantization as the kernel's MXU inputs).
    h_ref = jnp.maximum(bf(x) @ bf(w1) + b1, 0.0)
    ref = jax.nn.sigmoid(bf(h_ref) @ bf(w2) + b2)
    assert jnp.allclose(out, ref, atol=1e-2, rtol=1e-2), "mismatch vs bf16 reference"
    # Full-precision sanity check (loose tolerance for bf16 matmul inputs).
    ref_f32 = jax.nn.sigmoid(jnp.maximum(x @ w1 + b1, 0.0) @ w2 + b2)
    assert jnp.allclose(out, ref_f32, atol=5e-2, rtol=5e-2), "mismatch vs f32 reference"

    # --- Case 2: LeakyReLU + tanh, awkward batch; tiny VMEM budget forces the
    # hidden-dim (K) tiling path and a multi-step batch grid. ---
    batch2, in2, hid2, out2 = 30, 16, 512, 16
    x2 = jax.random.normal(kx2, (batch2, in2), jnp.float32)
    w1b, b1b, w2b, b2b = init_params(kp2, in2, hid2, out2)
    params2 = prepare_generator_params(w1b, b1b, w2b, b2b)

    out_2 = generator_fcn_forward(x2, params2, leaky=True, activation='tanh',
                                  vmem_budget_bytes=300 * 1024)
    out_2 = jax.block_until_ready(out_2)
    assert out_2.shape == (batch2, out2)

    h2 = bf(x2) @ bf(w1b) + b1b
    h2 = jnp.maximum(h2, 0.01 * h2)
    ref2 = jnp.tanh(bf(h2) @ bf(w2b) + b2b)
    assert jnp.allclose(out_2, ref2, atol=2e-2, rtol=2e-2), "mismatch vs bf16 reference (tiled)"

    print("KERNEL_OK")
</pallas_src>

<mosaic_0001>
module attributes {stable_mosaic.version = 11 : i64} {
  func.func @_generator_fcn_kernel(%arg0: i32, %arg1: i32, %arg2: memref<8x128xf32, #tpu.memory_space<vmem>>, %arg3: memref<128x128xbf16, #tpu.memory_space<vmem>>, %arg4: memref<1x128xf32, #tpu.memory_space<vmem>>, %arg5: memref<128x128xbf16, #tpu.memory_space<vmem>>, %arg6: memref<1x128xf32, #tpu.memory_space<vmem>>, %arg7: memref<8x128xf32, #tpu.memory_space<vmem>>, %arg8: memref<8x128xf32, #tpu.memory_space<vmem>>) attributes {dimension_semantics = [#tpu.dimension_semantics<parallel>, #tpu.dimension_semantics<arbitrary>], iteration_bounds = array<i64: 1, 1>, scalar_prefetch = 0 : i64, scratch_operands = 1 : i64, tpu.core_type = #tpu.core_type<tc>, window_params = [{transform_indices = @transform_0, window_bounds = array<i64: 8, 128>}, {pipeline_mode = #tpu.pipeline_mode<synchronous>, transform_indices = @transform_1, window_bounds = array<i64: 128, 128>}, {pipeline_mode = #tpu.pipeline_mode<synchronous>, transform_indices = @transform_2, window_bounds = array<i64: 1, 128>}, {pipeline_mode = #tpu.pipeline_mode<synchronous>, transform_indices = @transform_3, window_bounds = array<i64: 128, 128>}, {pipeline_mode = #tpu.pipeline_mode<synchronous>, transform_indices = @transform_4, window_bounds = array<i64: 1, 128>}, {transform_indices = @transform_5, window_bounds = array<i64: 8, 128>}]} {
    %c0_i32 = arith.constant 0 : i32
    %0 = arith.cmpi eq, %arg1, %c0_i32 : i32
    %1 = arith.extui %0 : i1 to i32
    %c0_i32_0 = arith.constant 0 : i32
    %2 = arith.cmpi ne, %1, %c0_i32_0 : i32
    scf.if %2 {
      %cst_16 = arith.constant 0.000000e+00 : f32
      %21 = vector.broadcast %cst_16 : f32 to vector<8x128xf32>
      %c0_17 = arith.constant 0 : index
      %c0_18 = arith.constant 0 : index
      %22 = vector.load %arg8[%c0_17, %c0_18] : memref<8x128xf32, #tpu.memory_space<vmem>>, vector<8x128xf32>
      tpu.vector_store %arg8[%c0_17, %c0_18], %21 {strides = array<i32>} : memref<8x128xf32, #tpu.memory_space<vmem>>, vector<8x128xf32>,
    } else {
    }
    %c0 = arith.constant 0 : index
    %c0_1 = arith.constant 0 : index
    %3 = vector.load %arg2[%c0, %c0_1] : memref<8x128xf32, #tpu.memory_space<vmem>>, vector<8x128xf32>
    %4 = arith.truncf %3 : vector<8x128xf32> to vector<8x128xbf16>
    %c0_2 = arith.constant 0 : index
    %c0_3 = arith.constant 0 : index
    %5 = vector.load %arg3[%c0_2, %c0_3] : memref<128x128xbf16, #tpu.memory_space<vmem>>, vector<128x128xbf16>
    %cst = arith.constant dense<0.000000e+00> : vector<8x128xf32>
    %6 = tpu.matmul %4, %5, %cst {dimension_numbers = #tpu.dot_dimension_numbers<[1], [0], [0], [1], [0, 0, 1, 1], [], []>} : vector<8x128xbf16>, vector<128x128xbf16>, vector<8x128xf32> -> vector<8x128xf32>
    %c0_4 = arith.constant 0 : index
    %c0_5 = arith.constant 0 : index
    %7 = vector.load %arg4[%c0_4, %c0_5] : memref<1x128xf32, #tpu.memory_space<vmem>>, vector<1x128xf32>
    %8 = vector.broadcast %7 : vector<1x128xf32> to vector<8x128xf32>
    %9 = arith.addf %6, %8 : vector<8x128xf32>
    %cst_6 = arith.constant 0.000000e+00 : f32
    %10 = vector.broadcast %cst_6 : f32 to vector<8x128xf32>
    %11 = arith.maximumf %9, %10 : vector<8x128xf32>
    %c0_7 = arith.constant 0 : index
    %c0_8 = arith.constant 0 : index
    %12 = vector.load %arg8[%c0_7, %c0_8] : memref<8x128xf32, #tpu.memory_space<vmem>>, vector<8x128xf32>
    %13 = arith.truncf %11 : vector<8x128xf32> to vector<8x128xbf16>
    %c0_9 = arith.constant 0 : index
    %c0_10 = arith.constant 0 : index
    %14 = vector.load %arg5[%c0_9, %c0_10] : memref<128x128xbf16, #tpu.memory_space<vmem>>, vector<128x128xbf16>
    %cst_11 = arith.constant dense<0.000000e+00> : vector<8x128xf32>
    %15 = tpu.matmul %13, %14, %cst_11 {dimension_numbers = #tpu.dot_dimension_numbers<[1], [0], [0], [1], [0, 0, 1, 1], [], []>} : vector<8x128xbf16>, vector<128x128xbf16>, vector<8x128xf32> -> vector<8x128xf32>
    %16 = arith.addf %12, %15 : vector<8x128xf32>
    %c0_12 = arith.constant 0 : index
    %c0_13 = arith.constant 0 : index
    %17 = vector.load %arg8[%c0_12, %c0_13] : memref<8x128xf32, #tpu.memory_space<vmem>>, vector<8x128xf32>
    tpu.vector_store %arg8[%c0_12, %c0_13], %16 {strides = array<i32>} : memref<8x128xf32, #tpu.memory_space<vmem>>, vector<8x128xf32>,
    %c0_i32_14 = arith.constant 0 : i32
    %18 = arith.cmpi eq, %arg1, %c0_i32_14 : i32
    %19 = arith.extui %18 : i1 to i32
    %c0_i32_15 = arith.constant 0 : i32
    %20 = arith.cmpi ne, %19, %c0_i32_15 : i32
    scf.if %20 {
      %c0_16 = arith.constant 0 : index
      %c0_17 = arith.constant 0 : index
      %21 = vector.load %arg8[%c0_16, %c0_17] : memref<8x128xf32, #tpu.memory_space<vmem>>, vector<8x128xf32>
      %c0_18 = arith.constant 0 : index
      %c0_19 = arith.constant 0 : index
      %22 = vector.load %arg6[%c0_18, %c0_19] : memref<1x128xf32, #tpu.memory_space<vmem>>, vector<1x128xf32>
      %23 = vector.broadcast %22 : vector<1x128xf32> to vector<8x128xf32>
      %24 = arith.addf %21, %23 : vector<8x128xf32>
      %cst_20 = arith.constant 5.000000e-01 : f32
      %25 = vector.broadcast %cst_20 : f32 to vector<8x128xf32>
      %26 = arith.mulf %25, %24 : vector<8x128xf32>
      %27 = math.tanh %26 : vector<8x128xf32>
      %cst_21 = arith.constant 1.000000e+00 : f32
      %28 = vector.broadcast %cst_21 : f32 to vector<8x128xf32>
      %29 = arith.addf %27, %28 : vector<8x128xf32>
      %cst_22 = arith.constant 5.000000e-01 : f32
      %30 = vector.broadcast %cst_22 : f32 to vector<8x128xf32>
      %31 = arith.mulf %30, %29 : vector<8x128xf32>
      %c0_23 = arith.constant 0 : index
      %c0_24 = arith.constant 0 : index
      %32 = vector.load %arg7[%c0_23, %c0_24] : memref<8x128xf32, #tpu.memory_space<vmem>>, vector<8x128xf32>
      tpu.vector_store %arg7[%c0_23, %c0_24], %31 {strides = array<i32>} : memref<8x128xf32, #tpu.memory_space<vmem>>, vector<8x128xf32>,
    } else {
    }
    return
  }
  func.func @transform_0(%arg0: i32, %arg1: i32) -> (i32, i32) {
    %c0_i32 = arith.constant 0 : i32
    %c0_i32_0 = arith.constant 0 : i32
    return %arg0, %c0_i32 : i32, i32
  }
  func.func @transform_1(%arg0: i32, %arg1: i32) -> (i32, i32) {
    %c0_i32 = arith.constant 0 : i32
    %c0_i32_0 = arith.constant 0 : i32
    return %c0_i32, %arg1 : i32, i32
  }
  func.func @transform_2(%arg0: i32, %arg1: i32) -> (i32, i32) {
    %c0_i32 = arith.constant 0 : i32
    %c0_i32_0 = arith.constant 0 : i32
    return %c0_i32, %arg1 : i32, i32
  }
  func.func @transform_3(%arg0: i32, %arg1: i32) -> (i32, i32) {
    %c0_i32 = arith.constant 0 : i32
    %c0_i32_0 = arith.constant 0 : i32
    return %arg1, %c0_i32 : i32, i32
  }
  func.func @transform_4(%arg0: i32, %arg1: i32) -> (i32, i32) {
    %c0_i32 = arith.constant 0 : i32
    %c0_i32_0 = arith.constant 0 : i32
    %c0_i32_1 = arith.constant 0 : i32
    return %c0_i32, %c0_i32_0 : i32, i32
  }
  func.func @transform_5(%arg0: i32, %arg1: i32) -> (i32, i32) {
    %c0_i32 = arith.constant 0 : i32
    %c0_i32_0 = arith.constant 0 : i32
    return %arg0, %c0_i32 : i32, i32
  }
}

module attributes {stable_mosaic.version = 11 : i64} {
  func.func @_generator_fcn_kernel(%arg0: i32, %arg1: i32, %arg2: memref<8x128xf32, #tpu.memory_space<vmem>>, %arg3: memref<128x128xbf16, #tpu.memory_space<vmem>>, %arg4: memref<1x128xf32, #tpu.memory_space<vmem>>, %arg5: memref<128x128xbf16, #tpu.memory_space<vmem>>, %arg6: memref<1x128xf32, #tpu.memory_space<vmem>>, %arg7: memref<8x128xf32, #tpu.memory_space<vmem>>, %arg8: memref<8x128xf32, #tpu.memory_space<vmem>>) attributes {dimension_semantics = [#tpu.dimension_semantics<parallel>, #tpu.dimension_semantics<arbitrary>], iteration_bounds = array<i64: 1, 1>, scalar_prefetch = 0 : i64, scratch_operands = 1 : i64, tpu.core_type = #tpu.core_type<tc>, window_params = [{transform_indices = @transform_0, window_bounds = array<i64: 8, 128>}, {transform_indices = @transform_1, window_bounds = array<i64: 128, 128>}, {transform_indices = @transform_2, window_bounds = array<i64: 1, 128>}, {transform_indices = @transform_3, window_bounds = array<i64: 128, 128>}, {pipeline_mode = #tpu.pipeline_mode<synchronous>, transform_indices = @transform_4, window_bounds = array<i64: 1, 128>}, {transform_indices = @transform_5, window_bounds = array<i64: 8, 128>}]} {
    %c0_i32 = arith.constant 0 : i32
    %0 = arith.cmpi eq, %arg1, %c0_i32 : i32
    %1 = arith.extui %0 : i1 to i32
    %c0_i32_0 = arith.constant 0 : i32
    %2 = arith.cmpi ne, %1, %c0_i32_0 : i32
    scf.if %2 {
      %cst_16 = arith.constant 0.000000e+00 : f32
      %21 = vector.broadcast %cst_16 : f32 to vector<8x128xf32>
      %c0_17 = arith.constant 0 : index
      %c0_18 = arith.constant 0 : index
      %22 = vector.load %arg8[%c0_17, %c0_18] : memref<8x128xf32, #tpu.memory_space<vmem>>, vector<8x128xf32>
      tpu.vector_store %arg8[%c0_17, %c0_18], %21 {strides = array<i32>} : memref<8x128xf32, #tpu.memory_space<vmem>>, vector<8x128xf32>,
    } else {
    }
    %c0 = arith.constant 0 : index
    %c0_1 = arith.constant 0 : index
    %3 = vector.load %arg2[%c0, %c0_1] : memref<8x128xf32, #tpu.memory_space<vmem>>, vector<8x128xf32>
    %4 = arith.truncf %3 : vector<8x128xf32> to vector<8x128xbf16>
    %c0_2 = arith.constant 0 : index
    %c0_3 = arith.constant 0 : index
    %5 = vector.load %arg3[%c0_2, %c0_3] : memref<128x128xbf16, #tpu.memory_space<vmem>>, vector<128x128xbf16>
    %cst = arith.constant dense<0.000000e+00> : vector<8x128xf32>
    %6 = tpu.matmul %4, %5, %cst {dimension_numbers = #tpu.dot_dimension_numbers<[1], [0], [0], [1], [0, 0, 1, 1], [], []>} : vector<8x128xbf16>, vector<128x128xbf16>, vector<8x128xf32> -> vector<8x128xf32>
    %c0_4 = arith.constant 0 : index
    %c0_5 = arith.constant 0 : index
    %7 = vector.load %arg4[%c0_4, %c0_5] : memref<1x128xf32, #tpu.memory_space<vmem>>, vector<1x128xf32>
    %8 = vector.broadcast %7 : vector<1x128xf32> to vector<8x128xf32>
    %9 = arith.addf %6, %8 : vector<8x128xf32>
    %cst_6 = arith.constant 0.000000e+00 : f32
    %10 = vector.broadcast %cst_6 : f32 to vector<8x128xf32>
    %11 = arith.maximumf %9, %10 : vector<8x128xf32>
    %c0_7 = arith.constant 0 : index
    %c0_8 = arith.constant 0 : index
    %12 = vector.load %arg8[%c0_7, %c0_8] : memref<8x128xf32, #tpu.memory_space<vmem>>, vector<8x128xf32>
    %13 = arith.truncf %11 : vector<8x128xf32> to vector<8x128xbf16>
    %c0_9 = arith.constant 0 : index
    %c0_10 = arith.constant 0 : index
    %14 = vector.load %arg5[%c0_9, %c0_10] : memref<128x128xbf16, #tpu.memory_space<vmem>>, vector<128x128xbf16>
    %cst_11 = arith.constant dense<0.000000e+00> : vector<8x128xf32>
    %15 = tpu.matmul %13, %14, %cst_11 {dimension_numbers = #tpu.dot_dimension_numbers<[1], [0], [0], [1], [0, 0, 1, 1], [], []>} : vector<8x128xbf16>, vector<128x128xbf16>, vector<8x128xf32> -> vector<8x128xf32>
    %16 = arith.addf %12, %15 : vector<8x128xf32>
    %c0_12 = arith.constant 0 : index
    %c0_13 = arith.constant 0 : index
    %17 = vector.load %arg8[%c0_12, %c0_13] : memref<8x128xf32, #tpu.memory_space<vmem>>, vector<8x128xf32>
    tpu.vector_store %arg8[%c0_12, %c0_13], %16 {strides = array<i32>} : memref<8x128xf32, #tpu.memory_space<vmem>>, vector<8x128xf32>,
    %c0_i32_14 = arith.constant 0 : i32
    %18 = arith.cmpi eq, %arg1, %c0_i32_14 : i32
    %19 = arith.extui %18 : i1 to i32
    %c0_i32_15 = arith.constant 0 : i32
    %20 = arith.cmpi ne, %19, %c0_i32_15 : i32
    scf.if %20 {
      %c0_16 = arith.constant 0 : index
      %c0_17 = arith.constant 0 : index
      %21 = vector.load %arg8[%c0_16, %c0_17] : memref<8x128xf32, #tpu.memory_space<vmem>>, vector<8x128xf32>
      %c0_18 = arith.constant 0 : index
      %c0_19 = arith.constant 0 : index
      %22 = vector.load %arg6[%c0_18, %c0_19] : memref<1x128xf32, #tpu.memory_space<vmem>>, vector<1x128xf32>
      %23 = vector.broadcast %22 : vector<1x128xf32> to vector<8x128xf32>
      %24 = arith.addf %21, %23 : vector<8x128xf32>
      %cst_20 = arith.constant 5.000000e-01 : f32
      %25 = vector.broadcast %cst_20 : f32 to vector<8x128xf32>
      %26 = arith.mulf %25, %24 : vector<8x128xf32>
      %27 = math.tanh %26 : vector<8x128xf32>
      %cst_21 = arith.constant 1.000000e+00 : f32
      %28 = vector.broadcast %cst_21 : f32 to vector<8x128xf32>
      %29 = arith.addf %27, %28 : vector<8x128xf32>
      %cst_22 = arith.constant 5.000000e-01 : f32
      %30 = vector.broadcast %cst_22 : f32 to vector<8x128xf32>
      %31 = arith.mulf %30, %29 : vector<8x128xf32>
      %c0_23 = arith.constant 0 : index
      %c0_24 = arith.constant 0 : index
      %32 = vector.load %arg7[%c0_23, %c0_24] : memref<8x128xf32, #tpu.memory_space<vmem>>, vector<8x128xf32>
      tpu.vector_store %arg7[%c0_23, %c0_24], %31 {strides = array<i32>} : memref<8x128xf32, #tpu.memory_space<vmem>>, vector<8x128xf32>,
    } else {
    }
    return
  }
  func.func @transform_0(%arg0: i32, %arg1: i32) -> (i32, i32) {
    %c0_i32 = arith.constant 0 : i32
    %c0_i32_0 = arith.constant 0 : i32
    return %arg0, %c0_i32 : i32, i32
  }
  func.func @transform_1(%arg0: i32, %arg1: i32) -> (i32, i32) {
    %c0_i32 = arith.constant 0 : i32
    %c0_i32_0 = arith.constant 0 : i32
    return %c0_i32, %arg1 : i32, i32
  }
  func.func @transform_2(%arg0: i32, %arg1: i32) -> (i32, i32) {
    %c0_i32 = arith.constant 0 : i32
    %c0_i32_0 = arith.constant 0 : i32
    return %c0_i32, %arg1 : i32, i32
  }
  func.func @transform_3(%arg0: i32, %arg1: i32) -> (i32, i32) {
    %c0_i32 = arith.constant 0 : i32
    %c0_i32_0 = arith.constant 0 : i32
    return %arg1, %c0_i32 : i32, i32
  }
  func.func @transform_4(%arg0: i32, %arg1: i32) -> (i32, i32) {
    %c0_i32 = arith.constant 0 : i32
    %c0_i32_0 = arith.constant 0 : i32
    %c0_i32_1 = arith.constant 0 : i32
    return %c0_i32, %c0_i32_0 : i32, i32
  }
  func.func @transform_5(%arg0: i32, %arg1: i32) -> (i32, i32) {
    %c0_i32 = arith.constant 0 : i32
    %c0_i32_0 = arith.constant 0 : i32
    return %arg0, %c0_i32 : i32, i32
  }
}

</mosaic_0001>

<bundles_post_ra>
// kernel: tpu_custom_call.1
= control target key start
LH: loop header
LB: loop body
LE: loop exit
PB: predicated region body
PF: predicated region fallthrough
CT: control target
= control target key end

     0   :  { %10 = vsyncpa [#allocation4], 0  ;;  %s615_s0 = inlined_call_operand.hbm [shape: f32[8,128], index: 0, kind: input, shape index: {}]   ;;  %s616_s1 = inlined_call_operand.hbm [shape: bf16[128,128], index: 1, kind: input, shape index: {}]   ;;  %s617_s2 = inlined_call_operand.vmem [shape: f32[1,128], index: 2, kind: input, shape index: {}]   ;;  %s618_s3 = inlined_call_operand.hbm [shape: bf16[128,128], index: 3, kind: input, shape index: {}]   ;;  %s619_s4 = inlined_call_operand.vmem [shape: f32[1,128], index: 4, kind: input, shape index: {}]   ;;  %s620_s5 = inlined_call_operand.hbm [shape: f32[8,128], index: 5, kind: output, shape index: {}]  }
   0x1   :  { %11 = vsyncpa [#allocation7], 0 }
   0x2   :  { %12 = vsyncpa [#allocation5], 0  ;;  %s517_s18 = smov [#allocation6]   ;;  %s423_s22 = scalar_lea.hbm %s616_s1, 1024 }
   0x3   :  { %s28_s19 = sshll.u32 %s517_s18, 4  ;;  %p424_p0 = scmp.ne.s32.totalorder %s616_s1, %s423_s22  ;;  %s29_s19 = int_to_ptr.vmem [resolvable:$true] %s28_s19 }
   0x4   :  { %p427_p1 = scmp.lt.u32.totalorder %s423_s22, %s616_s1 }
   0x6   :  { %p429_p2 = pnand %p427_p1, %p424_p0 }
   0x8   :  { %432 = shalt.err (!%p429_p2)
}
   0x9   :  { %s433_s27 = scalar_lea.vmem %s29_s19, 1024  ;;  %p438_p4 = scmp.lt.s32.totalorder %s29_s19, %s29_s19 }
   0xa   :  { %p434_p3 = scmp.ne.s32.totalorder %s29_s19, %s433_s27  ;;  %p439_p5 = scmp.lt.s32.totalorder %s433_s27, %s433_s27 }
   0xc   :  { %p440_p6 = por %p439_p5, %p438_p4 }
   0xe   :  { %p441_p7 = pnand %p440_p6, %p434_p3 }
  0x10   :  { %444 = shalt.err (!%p441_p7)
}
  0x11   :  { %s518_s28 = smov 64   ;;  %s519_s29 = smov 4  }
  0x12   :  { %34 = dma.hbm_to_vmem [thread:$0]  %s616_s1, 1024, %s29_s19, [#allocation7], %s518_s28, %s518_s28, %s519_s29  }
  0x13   :  { %s520_s7 = smov [#allocation3]   ;;  %s521_s9 = smov [#allocation8]  }
  0x14   :  { %s19_s8 = sshll.u32 %s520_s7, 4  ;;  %s42_s10 = sshll.u32 %s521_s9, 4  ;;  %s20_s8 = int_to_ptr.vmem [resolvable:$true] %s19_s8  ;;  %s43_s10 = int_to_ptr.vmem [resolvable:$true] %s42_s10 }
  0x15   :  { %s445_s13 = scalar_lea.hbm %s615_s0, 128 }
  0x16   :  { %p446_p8 = scmp.ne.s32.totalorder %s615_s0, %s445_s13  ;;  %p449_p9 = scmp.lt.u32.totalorder %s445_s13, %s615_s0 }
  0x18   :  { %p451_p10 = pnand %p449_p9, %p446_p8 }
  0x1a   :  { %454 = shalt.err (!%p451_p10)
}
  0x1b   :  { %s455_s1 = scalar_lea.vmem %s20_s8, 128  ;;  %p460_p12 = scmp.lt.s32.totalorder %s20_s8, %s20_s8 }
  0x1c   :  { %p456_p11 = scmp.ne.s32.totalorder %s20_s8, %s455_s1  ;;  %p461_p13 = scmp.lt.s32.totalorder %s455_s1, %s455_s1 }
  0x1e   :  { %p462_p0 = por %p461_p13, %p460_p12 }
  0x20   :  { %p463_p1 = pnand %p462_p0, %p456_p11 }
  0x22   :  { %466 = shalt.err (!%p463_p1)
}
  0x23   :  { %22 = dma.hbm_to_vmem [thread:$0]  %s615_s0, 128, %s20_s8, [#allocation4]  }
  0x24   :  { %s467_s22 = scalar_lea.hbm %s618_s3, 1024 }
  0x25   :  { %p468_p2 = scmp.ne.s32.totalorder %s618_s3, %s467_s22  ;;  %p471_p3 = scmp.lt.u32.totalorder %s467_s22, %s618_s3 }
  0x27   :  { %p473_p4 = pnand %p471_p3, %p468_p2 }
  0x29   :  { %476 = shalt.err (!%p473_p4)
}
  0x2a   :  { %s477_s27 = scalar_lea.vmem %s43_s10, 1024  ;;  %p482_p6 = scmp.lt.s32.totalorder %s43_s10, %s43_s10 }
  0x2b   :  { %p478_p5 = scmp.ne.s32.totalorder %s43_s10, %s477_s27  ;;  %p483_p7 = scmp.lt.s32.totalorder %s477_s27, %s477_s27 }
  0x2d   :  { %p484_p8 = por %p483_p7, %p482_p6 }
  0x2f   :  { %p485_p9 = pnand %p484_p8, %p478_p5 }
  0x31   :  { %488 = shalt.err (!%p485_p9)
}
  0x32   :  { %48 = dma.hbm_to_vmem [thread:$0]  %s618_s3, 1024, %s43_s10, [#allocation7], %s518_s28, %s518_s28, %s519_s29  }
  0x33   :  { %511 = dma.done.wait [#allocation4], 128  }
  0x34   :  { %512 = vsyncadd [#allocation4], 4294967168 }
  0x35   :  { %513 = dma.done.wait [#allocation7], 2048  }
  0x36   :  { %514 = vsyncadd [#allocation7], 4294965248  ;;  %v522_v0 = vmov 0.0   ;;  %vm523_vm0 = vmmov 0   ;;  %v405_v1 = vld [vmem:[#allocation6] sm:$0xff]   ;;  %v406_v2 = vld [vmem:[#allocation6 + $0x8] sm:$0xff]  }
  0x37   :  { %357 = vmatprep.subr.bf16.mxu0 %v522_v0  ;;  %373 = vmatprep.mubr.msk.bf16.mxu0 %vm523_vm0, %v522_v0  ;;  %v407_v3 = vld [vmem:[#allocation6 + $0x10] sm:$0xff]   ;;  %v413_v4 = vld [vmem:[#allocation8] sm:$0xff]   ;;  %v408_v5 = vld [vmem:[#allocation6 + $0x18] sm:$0xff]  }
  0x38   :  { %377 = vmatprep.subr.bf16.mxu1 %v522_v0  ;;  %393 = vmatprep.mubr.msk.bf16.mxu1 %vm523_vm0, %v522_v0  ;;  %v414_v6 = vld [vmem:[#allocation8 + $0x8] sm:$0xff]   ;;  %v409_v7 = vld [vmem:[#allocation6 + $0x20] sm:$0xff]   ;;  %v415_v8 = vld [vmem:[#allocation8 + $0x10] sm:$0xff]  }
  0x39   :  { %358 = vmatpush3.bf16.msra.mxu0 %v405_v1  ;;  %378 = vmatpush3.bf16.msra.mxu1 %v413_v4  ;;  %v410_v9 = vld [vmem:[#allocation6 + $0x28] sm:$0xff]   ;;  %v416_v10 = vld [vmem:[#allocation8 + $0x18] sm:$0xff]   ;;  %v411_v11 = vld [vmem:[#allocation6 + $0x30] sm:$0xff]  }
  0x3a   :  { %359 = vmatprep.subr.bf16.mxu0 %v522_v0  ;;  %379 = vmatprep.subr.bf16.mxu1 %v522_v0  ;;  %v417_v12 = vld [vmem:[#allocation8 + $0x20] sm:$0xff]   ;;  %v412_v13 = vld [vmem:[#allocation6 + $0x38] sm:$0xff]   ;;  %v418_v15 = vld [vmem:[#allocation8 + $0x28] sm:$0xff]  }
  0x3b   :  { %v66_v14 = vld [vmem:[#allocation3] sm:$0xff]  ;;  %v419_v17 = vld [vmem:[#allocation8 + $0x30] sm:$0xff]  }
  0x3c   :  { %v67_v16 = vpack.c.bf16 %v66_v14, %v66_v14  ;;  %v420_v18 = vld [vmem:[#allocation8 + $0x38] sm:$0xff]  }
  0x3d   :  { %360 = vmatpush3.bf16.msra.mxu0 %v406_v2  ;;  %380 = vmatpush3.bf16.msra.mxu1 %v414_v6  ;;  %v321_v19 = vld [vmem:[%s617_s2] ss:$0 sm:$0xff]  ;;  %s524_s2 = smov [#allocation9]  }
  0x3e   :  { %361 = vmatprep.subr.bf16.mxu0 %v522_v0  ;;  %381 = vmatprep.subr.bf16.mxu1 %v522_v0  ;;  %v338_v27 = vld [vmem:[%s619_s4] ss:$0 sm:$0xff]  ;;  %s311_s7 = sshll.u32 %s524_s2, 4  ;;  %s312_s7 = int_to_ptr.vmem [resolvable:$true] %s311_s7 }
  0x3f   :  { %s489_s8 = scalar_lea.vmem %s312_s7, 128  ;;  %p494_p11 = scmp.lt.s32.totalorder %s312_s7, %s312_s7 }
  0x40   :  { %p490_p10 = scmp.ne.s32.totalorder %s312_s7, %s489_s8  ;;  %p495_p12 = scmp.lt.s32.totalorder %s489_s8, %s489_s8 }
  0x41   :  { %362 = vmatpush3.bf16.msra.mxu0 %v407_v3  ;;  %382 = vmatpush3.bf16.msra.mxu1 %v415_v8 }
  0x42   :  { %363 = vmatprep.subr.bf16.mxu0 %v522_v0  ;;  %383 = vmatprep.subr.bf16.mxu1 %v522_v0  ;;  %p496_p13 = por %p495_p12, %p494_p11 }
  0x44   :  { %p497_p0 = pnand %p496_p13, %p490_p10 }
  0x45   :  { %364 = vmatpush3.bf16.msra.mxu0 %v408_v5  ;;  %384 = vmatpush3.bf16.msra.mxu1 %v416_v10 }
  0x46   :  { %365 = vmatprep.subr.bf16.mxu0 %v522_v0  ;;  %385 = vmatprep.subr.bf16.mxu1 %v522_v0 }
  0x49   :  { %366 = vmatpush3.bf16.msra.mxu0 %v409_v7  ;;  %386 = vmatpush3.bf16.msra.mxu1 %v417_v12 }
  0x4a   :  { %367 = vmatprep.subr.bf16.mxu0 %v522_v0  ;;  %387 = vmatprep.subr.bf16.mxu1 %v522_v0 }
  0x4d   :  { %368 = vmatpush3.bf16.msra.mxu0 %v410_v9  ;;  %388 = vmatpush3.bf16.msra.mxu1 %v418_v15 }
  0x4e   :  { %369 = vmatprep.subr.bf16.mxu0 %v522_v0  ;;  %389 = vmatprep.subr.bf16.mxu1 %v522_v0 }
  0x51   :  { %370 = vmatpush3.bf16.msra.mxu0 %v411_v11  ;;  %390 = vmatpush3.bf16.msra.mxu1 %v419_v17 }
  0x52   :  { %371 = vmatprep.subr.bf16.mxu0 %v522_v0  ;;  %391 = vmatprep.subr.bf16.mxu1 %v522_v0 }
  0x55   :  { %372 = vmatpush3.bf16.msra.mxu0 %v412_v13  ;;  %392 = vmatpush3.bf16.msra.mxu1 %v420_v18 }
  0x58   :  { %374 = vmatmul.mubr.bf16.vlgmr.msra.gmra.mrb[0].mxu0 %v67_v16 }
 0x12b   :  { %v173_v20 = vpop.f32.mrb[0].mxu0 }
 0x12c   :  { %v174_v21 = vadd.f32 %v321_v19, %v173_v20  ;;  %v375_v22 = vpop.f32.mrb[1].mxu0 }
 0x12d   :  { %v176_v23 = vpop.f32.mrb[2].mxu0 }
 0x12e   :  { %v179_v24 = vmax.f32 %v174_v21, 0.0  ;;  %v376_v25 = vpop.f32.mrb[3].mxu0 }
 0x130   :  { %v181_v26 = vpack.c.bf16 %v179_v24, %v179_v24 }
 0x132   :  { %394 = vmatmul.mubr.bf16.vlgmr.msra.gmra.mrb[0].mxu1 %v181_v26 }
 0x205   :  { %v280_v28 = vpop.f32.mrb[0].mxu1 }
 0x206   :  { %v299_v29 = vadd.f32 %v338_v27, %v280_v28  ;;  %v395_v30 = vpop.f32.mrb[1].mxu1 }
 0x207   :  { %v283_v31 = vpop.f32.mrb[2].mxu1 }
 0x208   :  { %v300_v32 = vmul.f32 0.5, %v299_v29  ;;  %v396_v33 = vpop.f32.mrb[3].mxu1 }
 0x20a   :  { %421 = vtanh.f32 %v300_v32 }
 0x214   :  { %v422_v34 = vpop.eup %421 }
 0x215   :  { %v302_v35 = vadd.f32 1.0, %v422_v34 }
 0x217   :  { %v303_v36 = vmul.f32 0.5, %v302_v35 }
 0x219   :  { %304 = vst [vmem:[#allocation9] sm:$0xff] %v303_v36 }
 0x21a   :  { %500 = shalt.err (!%p497_p0)
}
 0x21b   :  { %s501_s10 = scalar_lea.hbm %s620_s5, 128 }
 0x21c   :  { %p502_p1 = scmp.ne.s32.totalorder %s620_s5, %s501_s10  ;;  %p505_p2 = scmp.lt.u32.totalorder %s501_s10, %s620_s5 }
 0x21e   :  { %p507_p3 = pnand %p505_p2, %p502_p1 }
 0x220   :  { %510 = shalt.err (!%p507_p3)
}
 0x221   :  { %314 = dma.vmem_to_hbm [thread:$0]  %s312_s7, 128, %s620_s5, [#allocation5]  }
 0x222   :  { %515 = dma.done.wait [#allocation5], 128  }
 0x223   :  { %516 = vsyncadd [#allocation5], 4294967168 }
 0x224   :  { %318 = vsyncpa [#allocation4], 1 }
 0x225   :  { %319 = vsyncpa [#allocation7], 1 }
 0x226   :  { %320 = vsyncpa [#allocation5], 1 }

// kernel: tpu_custom_call.1
= control target key start
LH: loop header
LB: loop body
LE: loop exit
PB: predicated region body
PF: predicated region fallthrough
CT: control target
= control target key end

     0   :  { %10 = vsyncpa [#allocation4], 0  ;;  %s615_s0 = inlined_call_operand.hbm [shape: f32[8,128], index: 0, kind: input, shape index: {}]   ;;  %s616_s1 = inlined_call_operand.hbm [shape: bf16[128,128], index: 1, kind: input, shape index: {}]   ;;  %s617_s2 = inlined_call_operand.vmem [shape: f32[1,128], index: 2, kind: input, shape index: {}]   ;;  %s618_s3 = inlined_call_operand.hbm [shape: bf16[128,128], index: 3, kind: input, shape index: {}]   ;;  %s619_s4 = inlined_call_operand.vmem [shape: f32[1,128], index: 4, kind: input, shape index: {}]   ;;  %s620_s5 = inlined_call_operand.hbm [shape: f32[8,128], index: 5, kind: output, shape index: {}]  }
   0x1   :  { %11 = vsyncpa [#allocation7], 0 }
   0x2   :  { %12 = vsyncpa [#allocation5], 0  ;;  %s517_s18 = smov [#allocation6]   ;;  %s423_s22 = scalar_lea.hbm %s616_s1, 1024 }
   0x3   :  { %s28_s19 = sshll.u32 %s517_s18, 4  ;;  %p424_p0 = scmp.ne.s32.totalorder %s616_s1, %s423_s22  ;;  %s29_s19 = int_to_ptr.vmem [resolvable:$true] %s28_s19 }
   0x4   :  { %p427_p1 = scmp.lt.u32.totalorder %s423_s22, %s616_s1 }
   0x6   :  { %p429_p2 = pnand %p427_p1, %p424_p0 }
   0x8   :  { %432 = shalt.err (!%p429_p2)
}
   0x9   :  { %s433_s27 = scalar_lea.vmem %s29_s19, 1024  ;;  %p438_p4 = scmp.lt.s32.totalorder %s29_s19, %s29_s19 }
   0xa   :  { %p434_p3 = scmp.ne.s32.totalorder %s29_s19, %s433_s27  ;;  %p439_p5 = scmp.lt.s32.totalorder %s433_s27, %s433_s27 }
   0xc   :  { %p440_p6 = por %p439_p5, %p438_p4 }
   0xe   :  { %p441_p7 = pnand %p440_p6, %p434_p3 }
  0x10   :  { %444 = shalt.err (!%p441_p7)
}
  0x11   :  { %s518_s28 = smov 64   ;;  %s519_s29 = smov 4  }
  0x12   :  { %34 = dma.hbm_to_vmem [thread:$0]  %s616_s1, 1024, %s29_s19, [#allocation7], %s518_s28, %s518_s28, %s519_s29  }
  0x13   :  { %s520_s7 = smov [#allocation3]   ;;  %s521_s9 = smov [#allocation8]  }
  0x14   :  { %s19_s8 = sshll.u32 %s520_s7, 4  ;;  %s42_s10 = sshll.u32 %s521_s9, 4  ;;  %s20_s8 = int_to_ptr.vmem [resolvable:$true] %s19_s8  ;;  %s43_s10 = int_to_ptr.vmem [resolvable:$true] %s42_s10 }
  0x15   :  { %s445_s13 = scalar_lea.hbm %s615_s0, 128 }
  0x16   :  { %p446_p8 = scmp.ne.s32.totalorder %s615_s0, %s445_s13  ;;  %p449_p9 = scmp.lt.u32.totalorder %s445_s13, %s615_s0 }
  0x18   :  { %p451_p10 = pnand %p449_p9, %p446_p8 }
  0x1a   :  { %454 = shalt.err (!%p451_p10)
}
  0x1b   :  { %s455_s1 = scalar_lea.vmem %s20_s8, 128  ;;  %p460_p12 = scmp.lt.s32.totalorder %s20_s8, %s20_s8 }
  0x1c   :  { %p456_p11 = scmp.ne.s32.totalorder %s20_s8, %s455_s1  ;;  %p461_p13 = scmp.lt.s32.totalorder %s455_s1, %s455_s1 }
  0x1e   :  { %p462_p0 = por %p461_p13, %p460_p12 }
  0x20   :  { %p463_p1 = pnand %p462_p0, %p456_p11 }
  0x22   :  { %466 = shalt.err (!%p463_p1)
}
  0x23   :  { %22 = dma.hbm_to_vmem [thread:$0]  %s615_s0, 128, %s20_s8, [#allocation4]  }
  0x24   :  { %s467_s22 = scalar_lea.hbm %s618_s3, 1024 }
  0x25   :  { %p468_p2 = scmp.ne.s32.totalorder %s618_s3, %s467_s22  ;;  %p471_p3 = scmp.lt.u32.totalorder %s467_s22, %s618_s3 }
  0x27   :  { %p473_p4 = pnand %p471_p3, %p468_p2 }
  0x29   :  { %476 = shalt.err (!%p473_p4)
}
  0x2a   :  { %s477_s27 = scalar_lea.vmem %s43_s10, 1024  ;;  %p482_p6 = scmp.lt.s32.totalorder %s43_s10, %s43_s10 }
  0x2b   :  { %p478_p5 = scmp.ne.s32.totalorder %s43_s10, %s477_s27  ;;  %p483_p7 = scmp.lt.s32.totalorder %s477_s27, %s477_s27 }
  0x2d   :  { %p484_p8 = por %p483_p7, %p482_p6 }
  0x2f   :  { %p485_p9 = pnand %p484_p8, %p478_p5 }
  0x31   :  { %488 = shalt.err (!%p485_p9)
}
  0x32   :  { %48 = dma.hbm_to_vmem [thread:$0]  %s618_s3, 1024, %s43_s10, [#allocation7], %s518_s28, %s518_s28, %s519_s29  }
  0x33   :  { %511 = dma.done.wait [#allocation4], 128  }
  0x34   :  { %512 = vsyncadd [#allocation4], 4294967168 }
  0x35   :  { %513 = dma.done.wait [#allocation7], 2048  }
  0x36   :  { %514 = vsyncadd [#allocation7], 4294965248  ;;  %v522_v0 = vmov 0.0   ;;  %vm523_vm0 = vmmov 0   ;;  %v405_v1 = vld [vmem:[#allocation6] sm:$0xff]   ;;  %v406_v2 = vld [vmem:[#allocation6 + $0x8] sm:$0xff]  }
  0x37   :  { %357 = vmatprep.subr.bf16.mxu0 %v522_v0  ;;  %373 = vmatprep.mubr.msk.bf16.mxu0 %vm523_vm0, %v522_v0  ;;  %v407_v3 = vld [vmem:[#allocation6 + $0x10] sm:$0xff]   ;;  %v413_v4 = vld [vmem:[#allocation8] sm:$0xff]   ;;  %v408_v5 = vld [vmem:[#allocation6 + $0x18] sm:$0xff]  }
  0x38   :  { %377 = vmatprep.subr.bf16.mxu1 %v522_v0  ;;  %393 = vmatprep.mubr.msk.bf16.mxu1 %vm523_vm0, %v522_v0  ;;  %v414_v6 = vld [vmem:[#allocation8 + $0x8] sm:$0xff]   ;;  %v409_v7 = vld [vmem:[#allocation6 + $0x20] sm:$0xff]   ;;  %v415_v8 = vld [vmem:[#allocation8 + $0x10] sm:$0xff]  }
  0x39   :  { %358 = vmatpush3.bf16.msra.mxu0 %v405_v1  ;;  %378 = vmatpush3.bf16.msra.mxu1 %v413_v4  ;;  %v410_v9 = vld [vmem:[#allocation6 + $0x28] sm:$0xff]   ;;  %v416_v10 = vld [vmem:[#allocation8 + $0x18] sm:$0xff]   ;;  %v411_v11 = vld [vmem:[#allocation6 + $0x30] sm:$0xff]  }
  0x3a   :  { %359 = vmatprep.subr.bf16.mxu0 %v522_v0  ;;  %379 = vmatprep.subr.bf16.mxu1 %v522_v0  ;;  %v417_v12 = vld [vmem:[#allocation8 + $0x20] sm:$0xff]   ;;  %v412_v13 = vld [vmem:[#allocation6 + $0x38] sm:$0xff]   ;;  %v418_v15 = vld [vmem:[#allocation8 + $0x28] sm:$0xff]  }
  0x3b   :  { %v66_v14 = vld [vmem:[#allocation3] sm:$0xff]  ;;  %v419_v17 = vld [vmem:[#allocation8 + $0x30] sm:$0xff]  }
  0x3c   :  { %v67_v16 = vpack.c.bf16 %v66_v14, %v66_v14  ;;  %v420_v18 = vld [vmem:[#allocation8 + $0x38] sm:$0xff]  }
  0x3d   :  { %360 = vmatpush3.bf16.msra.mxu0 %v406_v2  ;;  %380 = vmatpush3.bf16.msra.mxu1 %v414_v6  ;;  %v321_v19 = vld [vmem:[%s617_s2] ss:$0 sm:$0xff]  ;;  %s524_s2 = smov [#allocation9]  }
  0x3e   :  { %361 = vmatprep.subr.bf16.mxu0 %v522_v0  ;;  %381 = vmatprep.subr.bf16.mxu1 %v522_v0  ;;  %v338_v27 = vld [vmem:[%s619_s4] ss:$0 sm:$0xff]  ;;  %s311_s7 = sshll.u32 %s524_s2, 4  ;;  %s312_s7 = int_to_ptr.vmem [resolvable:$true] %s311_s7 }
  0x3f   :  { %s489_s8 = scalar_lea.vmem %s312_s7, 128  ;;  %p494_p11 = scmp.lt.s32.totalorder %s312_s7, %s312_s7 }
  0x40   :  { %p490_p10 = scmp.ne.s32.totalorder %s312_s7, %s489_s8  ;;  %p495_p12 = scmp.lt.s32.totalorder %s489_s8, %s489_s8 }
  0x41   :  { %362 = vmatpush3.bf16.msra.mxu0 %v407_v3  ;;  %382 = vmatpush3.bf16.msra.mxu1 %v415_v8 }
  0x42   :  { %363 = vmatprep.subr.bf16.mxu0 %v522_v0  ;;  %383 = vmatprep.subr.bf16.mxu1 %v522_v0  ;;  %p496_p13 = por %p495_p12, %p494_p11 }
  0x44   :  { %p497_p0 = pnand %p496_p13, %p490_p10 }
  0x45   :  { %364 = vmatpush3.bf16.msra.mxu0 %v408_v5  ;;  %384 = vmatpush3.bf16.msra.mxu1 %v416_v10 }
  0x46   :  { %365 = vmatprep.subr.bf16.mxu0 %v522_v0  ;;  %385 = vmatprep.subr.bf16.mxu1 %v522_v0 }
  0x49   :  { %366 = vmatpush3.bf16.msra.mxu0 %v409_v7  ;;  %386 = vmatpush3.bf16.msra.mxu1 %v417_v12 }
  0x4a   :  { %367 = vmatprep.subr.bf16.mxu0 %v522_v0  ;;  %387 = vmatprep.subr.bf16.mxu1 %v522_v0 }
  0x4d   :  { %368 = vmatpush3.bf16.msra.mxu0 %v410_v9  ;;  %388 = vmatpush3.bf16.msra.mxu1 %v418_v15 }
  0x4e   :  { %369 = vmatprep.subr.bf16.mxu0 %v522_v0  ;;  %389 = vmatprep.subr.bf16.mxu1 %v522_v0 }
  0x51   :  { %370 = vmatpush3.bf16.msra.mxu0 %v411_v11  ;;  %390 = vmatpush3.bf16.msra.mxu1 %v419_v17 }
  0x52   :  { %371 = vmatprep.subr.bf16.mxu0 %v522_v0  ;;  %391 = vmatprep.subr.bf16.mxu1 %v522_v0 }
  0x55   :  { %372 = vmatpush3.bf16.msra.mxu0 %v412_v13  ;;  %392 = vmatpush3.bf16.msra.mxu1 %v420_v18 }
  0x58   :  { %374 = vmatmul.mubr.bf16.vlgmr.msra.gmra.mrb[0].mxu0 %v67_v16 }
 0x12b   :  { %v173_v20 = vpop.f32.mrb[0].mxu0 }
 0x12c   :  { %v174_v21 = vadd.f32 %v321_v19, %v173_v20  ;;  %v375_v22 = vpop.f32.mrb[1].mxu0 }
 0x12d   :  { %v176_v23 = vpop.f32.mrb[2].mxu0 }
 0x12e   :  { %v179_v24 = vmax.f32 %v174_v21, 0.0  ;;  %v376_v25 = vpop.f32.mrb[3].mxu0 }
 0x130   :  { %v181_v26 = vpack.c.bf16 %v179_v24, %v179_v24 }
 0x132   :  { %394 = vmatmul.mubr.bf16.vlgmr.msra.gmra.mrb[0].mxu1 %v181_v26 }
 0x205   :  { %v280_v28 = vpop.f32.mrb[0].mxu1 }
 0x206   :  { %v299_v29 = vadd.f32 %v338_v27, %v280_v28  ;;  %v395_v30 = vpop.f32.mrb[1].mxu1 }
 0x207   :  { %v283_v31 = vpop.f32.mrb[2].mxu1 }
 0x208   :  { %v300_v32 = vmul.f32 0.5, %v299_v29  ;;  %v396_v33 = vpop.f32.mrb[3].mxu1 }
 0x20a   :  { %421 = vtanh.f32 %v300_v32 }
 0x214   :  { %v422_v34 = vpop.eup %421 }
 0x215   :  { %v302_v35 = vadd.f32 1.0, %v422_v34 }
 0x217   :  { %v303_v36 = vmul.f32 0.5, %v302_v35 }
 0x219   :  { %304 = vst [vmem:[#allocation9] sm:$0xff] %v303_v36 }
 0x21a   :  { %500 = shalt.err (!%p497_p0)
}
 0x21b   :  { %s501_s10 = scalar_lea.hbm %s620_s5, 128 }
 0x21c   :  { %p502_p1 = scmp.ne.s32.totalorder %s620_s5, %s501_s10  ;;  %p505_p2 = scmp.lt.u32.totalorder %s501_s10, %s620_s5 }
 0x21e   :  { %p507_p3 = pnand %p505_p2, %p502_p1 }
 0x220   :  { %510 = shalt.err (!%p507_p3)
}
 0x221   :  { %314 = dma.vmem_to_hbm [thread:$0]  %s312_s7, 128, %s620_s5, [#allocation5]  }
 0x222   :  { %515 = dma.done.wait [#allocation5], 128  }
 0x223   :  { %516 = vsyncadd [#allocation5], 4294967168 }
 0x224   :  { %318 = vsyncpa [#allocation4], 1 }
 0x225   :  { %319 = vsyncpa [#allocation7], 1 }
 0x226   :  { %320 = vsyncpa [#allocation5], 1 }

</bundles_post_ra>
